<compile_context>
chip_gen: v7x
topology: tpu7x:2x2x1
jax: 0.10.0
libtpu: 0.0.40
codegen_flags: <defaults>
</compile_context>

<pallas_src>
import numpy as np
import jax
import jax.numpy as jnp
from jax.experimental import pallas as pl
from jax.experimental.pallas import tpu as pltpu


def _round_up(x, m):
    return ((x + m - 1) // m) * m


def fourier_layer_kernel(v_ref, bf_ref, binv_ref, wa_ref, wb_ref, wl_ref, bias_ref,
                         o_ref, pscr):
    d, out_cp, pack = wa_ref.shape
    rows, n = v_ref.shape
    bt = rows // d                       # batch rows in this tile
    m_half = pack // 2
    cdt = bf_ref.dtype                   # MXU operand dtype (f32 or bf16)

    v2 = v_ref[...]                                                       # (bt*d, n)

    # ---- forward truncated rfft: ONE packed matmul, M = bt*d -----------------------
    # lanes [0:modes) hold F_re, lanes [m_half:m_half+modes) hold F_im (-sin basis).
    f_pk = jnp.dot(v2, bf_ref[...], preferred_element_type=jnp.float32)   # (bt*d, pack)
    # [F_im | F_re] via one XLU lane rotation (free-ish slot; no extra matmul/basis).
    f_sw = pltpu.roll(f_pk, shift=m_half, axis=1)

    # ---- per-mode complex channel mixing (VPU filler under the MXU work) -----------
    # Packed: P = [P_re | P_im] = sum_d F_pk * [W_re|W_re] + F_sw * [-W_im|W_im].
    # One (out_cp, pack) accumulator live at a time; aligned scratch write per row.
    # TODO(synk): for large d switch the inner unroll to lax.fori_loop and/or use
    # stride-0 ref broadcast-loads of the F rows to drop the per-row broadcasts.
    for i in range(bt):
        acc = jnp.zeros((out_cp, pack), jnp.float32)
        for dd in range(d):
            r = i * d + dd
            acc = acc + f_pk[r:r + 1, :] * wa_ref[dd] + f_sw[r:r + 1, :] * wb_ref[dd]
        pscr[i * out_cp:(i + 1) * out_cp, :] = acc                        # aligned: out_cp % 8 == 0

    # ---- truncated irfft: ONE matmul against the pre-transposed packed basis -------
    k_out = jnp.dot(pscr[...].astype(cdt), binv_ref[...],
                    preferred_element_type=jnp.float32)                   # (bt*out_cp, n)

    # ---- 1x1 Conv1d: per-batch dense (out_cp, d) @ (d, n) matmuls + bias -----------
    wl = wl_ref[...]                                                      # (out_cp, d), MXU dtype
    bias = bias_ref[...]                                                  # (out_cp, 1), f32
    for i in range(bt):
        lin_i = jnp.dot(wl, v2[i * d:(i + 1) * d, :],
                        preferred_element_type=jnp.float32) + bias        # (out_cp, n)
        o_ref[i * out_cp:(i + 1) * out_cp, :] = (
            lin_i + k_out[i * out_cp:(i + 1) * out_cp, :]).astype(o_ref.dtype)


def _vmem_capacity_bytes():
    try:
        return int(pltpu.get_tpu_info().vmem_capacity_bytes)
    except Exception:
        return 64 * 1024 * 1024          # conservative fallback (v7x-sized)


def _choose_block_b(b, d, out_cp, n, pack, elt, vmem_cap, use_bf16):
    """Largest divisor of b whose per-step VMEM fits ~70% of capacity.
    Keeps >=2 grid steps only on 2-TensorCore parts (<=96 MiB VMEM, i.e. v7x-class)."""
    budget = int(vmem_cap * 0.70)
    row_align = 16 if use_bf16 else 8
    multi_core = vmem_cap <= 96 * 1024 * 1024
    const_bytes = 2 * (2 * n * pack * elt                 # fwd + inv bases (double-buffered)
                       + 2 * d * out_cp * pack * 4        # packed spectral weights (f32)
                       + out_cp * d * elt + out_cp * 4)   # conv weight + bias

    def rows_ok(bt):
        return (bt * d) % row_align == 0 or bt == b       # (8,128) / bf16 (16,128) tile rule

    def vmem_bytes(bt):
        return (const_bytes
                + 2 * bt * d * n * elt                    # v tile (double-buffered)
                + 2 * bt * out_cp * n * 4                 # output tile (double-buffered)
                + bt * out_cp * pack * 4                  # P scratch (single buffer)
                + 2 * bt * d * pack * 4                   # f_pk / f_sw temporaries
                + bt * out_cp * n * 4                     # k_out temporary
                + 2 * out_cp * max(n, pack) * 4)          # acc / lin_i live values

    candidates = [bt for bt in range(1, b + 1) if b % bt == 0 and rows_ok(bt)]
    if not candidates:
        return b
    feasible = [bt for bt in candidates if vmem_bytes(bt) <= budget]
    if multi_core and b > 1:
        feas2 = [bt for bt in feasible if b // bt >= 2]   # keep both TensorCores busy
        if feas2:
            feasible = feas2
    if feasible:
        return max(feasible)
    return min(candidates)


def fourier_layer_1d(v, w_re, w_im, wl, bias, modes, *, block_b=None, use_bf16_mxu=False):
    b, d, n = v.shape
    out_c = wl.shape[0]
    assert wl.shape[1] == d
    assert modes <= n // 2 + 1, "modes must be <= n//2 + 1 (rfft truncation)"
    orig_dtype = v.dtype

    # ---- packed modes axis: cos in [0:modes), -sin in [m_half:m_half+modes) --------
    m_half = 64 if modes <= 64 else _round_up(modes, 128)
    pack = 2 * m_half
    out_cp = _round_up(out_c, 8)                  # sublane-aligned output channels

    mxu_dtype = jnp.bfloat16 if use_bf16_mxu else jnp.float32
    elt = 2 if use_bf16_mxu else 4

    # ---- DFT bases built host-side in f64 with integer range reduction -------------
    tt = np.arange(n, dtype=np.int64)[:, None]
    kk = np.arange(modes, dtype=np.int64)[None, :]
    ang = 2.0 * np.pi * ((tt * kk) % n).astype(np.float64) / n            # (n, modes)
    cos_np, sin_np = np.cos(ang), np.sin(ang)
    bf_np = np.zeros((n, pack), np.float64)
    bf_np[:, :modes] = cos_np
    bf_np[:, m_half:m_half + modes] = -sin_np
    # inverse basis: Hermitian weights c_k/n folded in, stored pre-transposed (pack, n)
    ck = np.full((modes,), 2.0, np.float64)
    ck[0] = 1.0
    if n % 2 == 0 and modes > n // 2:
        ck[n // 2] = 1.0
    binv_np = np.zeros((pack, n), np.float64)
    binv_np[:modes, :] = (ck[:, None] / n) * cos_np.T
    binv_np[m_half:m_half + modes, :] = -(ck[:, None] / n) * sin_np.T
    bf = jnp.asarray(bf_np, mxu_dtype)
    binv = jnp.asarray(binv_np, mxu_dtype)

    # ---- packed spectral weights: Wa = [W_re|W_re], Wb = [-W_im|W_im]  (f32, VPU) ---
    w_re_f = w_re.astype(jnp.float32)
    w_im_f = w_im.astype(jnp.float32)
    wa = jnp.zeros((d, out_cp, pack), jnp.float32)
    wa = wa.at[:, :out_c, :modes].set(w_re_f)
    wa = wa.at[:, :out_c, m_half:m_half + modes].set(w_re_f)
    wb = jnp.zeros((d, out_cp, pack), jnp.float32)
    wb = wb.at[:, :out_c, :modes].set(-w_im_f)
    wb = wb.at[:, :out_c, m_half:m_half + modes].set(w_im_f)

    # ---- 1x1 conv weight / bias (output channels zero-padded to out_cp) ------------
    wl_p = jnp.zeros((out_cp, d), mxu_dtype).at[:out_c, :].set(wl.astype(mxu_dtype))
    bias_p = jnp.zeros((out_cp, 1), jnp.float32).at[:out_c, 0].set(bias.astype(jnp.float32))

    # ---- batch tile (generation-aware VMEM policy) ----------------------------------
    vmem_cap = _vmem_capacity_bytes()
    if block_b is None:
        block_b = _choose_block_b(b, d, out_cp, n, pack, elt, vmem_cap, use_bf16_mxu)
    assert b % block_b == 0, "block_b must divide the batch size"
    bt = block_b
    grid_b = b // bt
    vmem_limit = max(16 * 1024 * 1024, int(vmem_cap * 0.85))

    v2d = v.reshape(b * d, n).astype(mxu_dtype)

    flops = int(2 * b * d * n * pack               # forward DFT
                + 2 * b * out_cp * pack * n        # inverse DFT
                + 2 * b * out_cp * d * n           # 1x1 conv
                + 4 * b * d * out_cp * pack)       # channel mixing (VPU)
    bytes_accessed = int(b * d * n * elt + b * out_cp * n * 4
                         + 2 * n * pack * elt + 2 * d * out_cp * pack * 4
                         + out_cp * d * elt + out_cp * 4)

    out2d = pl.pallas_call(
        fourier_layer_kernel,
        out_shape=jax.ShapeDtypeStruct((b * out_cp, n), orig_dtype),
        grid_spec=pltpu.PrefetchScalarGridSpec(
            num_scalar_prefetch=0,
            grid=(grid_b,),
            in_specs=[
                pl.BlockSpec((bt * d, n), lambda i: (i, 0)),              # v (batch tile)
                pl.BlockSpec((n, pack), lambda i: (0, 0)),                # packed fwd basis
                pl.BlockSpec((pack, n), lambda i: (0, 0)),                # packed inv basis (pre-T)
                pl.BlockSpec((d, out_cp, pack), lambda i: (0, 0, 0)),     # Wa = [W_re|W_re]
                pl.BlockSpec((d, out_cp, pack), lambda i: (0, 0, 0)),     # Wb = [-W_im|W_im]
                pl.BlockSpec((out_cp, d), lambda i: (0, 0)),              # conv weight
                pl.BlockSpec((out_cp, 1), lambda i: (0, 0)),              # conv bias
            ],
            out_specs=pl.BlockSpec((bt * out_cp, n), lambda i: (i, 0)),
            scratch_shapes=[
                pltpu.VMEM((bt * out_cp, pack), jnp.float32),             # packed P scratch
            ],
        ),
        compiler_params=pltpu.CompilerParams(
            dimension_semantics=("parallel",),
            vmem_limit_bytes=vmem_limit),
        cost_estimate=pl.CostEstimate(flops=flops, transcendentals=0,
                                      bytes_accessed=bytes_accessed),
    )(v2d, bf, binv, wa, wb, wl_p, bias_p)

    out = out2d.reshape(b, out_cp, n)
    if out_cp != out_c:
        out = out[:, :out_c, :]
    return out


def reference(v, w_re, w_im, wl, bias, modes):
    """Pure-JAX reference mirroring the PyTorch forward exactly."""
    b, d, n = v.shape
    out_c = wl.shape[0]
    F = jnp.fft.rfft(v)
    kern = (w_re + 1j * w_im).astype(jnp.complex64)
    P = jnp.zeros((b, out_c, n // 2 + 1), dtype=jnp.complex64)
    P = P.at[:, :, :modes].set(jnp.einsum('ijk,jlk->ilk', F[:, :, :modes], kern))
    K = jnp.fft.irfft(P, n=n)
    lin = jnp.einsum('od,bdn->bon', wl, v) + bias[None, :, None]
    return lin + K


if __name__ == "__main__":
    b, in_c, out_c, n, modes = 4, 4, 4, 128, 16

    key = jax.random.PRNGKey(0)
    k1, k2, k3, k4, k5 = jax.random.split(key, 5)

    # Deterministic parameter init mirroring the module's __init__ shapes:
    #   kernel: complex (in_c, out_c, modes), scaled uniform [0,1)/(in*out)
    #   Conv1d(in_c, out_c, 1): weight (out_c, in_c), bias (out_c,)
    scale = 1.0 / (in_c * out_c)
    w_re = scale * jax.random.uniform(k1, (in_c, out_c, modes), jnp.float32)
    w_im = scale * jax.random.uniform(k2, (in_c, out_c, modes), jnp.float32)
    lim = 1.0 / np.sqrt(in_c)
    wl = jax.random.uniform(k3, (out_c, in_c), jnp.float32, -lim, lim)
    bias = jax.random.uniform(k4, (out_c,), jnp.float32, -lim, lim)

    v = jax.random.normal(k5, (b, in_c, n), jnp.float32)

    out = jax.block_until_ready(fourier_layer_1d(v, w_re, w_im, wl, bias, modes))
    ref = reference(v, w_re, w_im, wl, bias, modes)

    assert out.shape == (b, out_c, n)
    np.testing.assert_allclose(np.asarray(out), np.asarray(ref), atol=1e-4, rtol=1e-4)
    print("KERNEL_OK")
</pallas_src>

<mosaic_0001>
module attributes {stable_mosaic.version = 11 : i64} {
  func.func @fourier_layer_kernel(%arg0: i32, %arg1: memref<8x128xf32, #tpu.memory_space<vmem>>, %arg2: memref<128x128xf32, #tpu.memory_space<vmem>>, %arg3: memref<128x128xf32, #tpu.memory_space<vmem>>, %arg4: memref<4x8x128xf32, #tpu.memory_space<vmem>>, %arg5: memref<4x8x128xf32, #tpu.memory_space<vmem>>, %arg6: memref<8x4xf32, #tpu.memory_space<vmem>>, %arg7: memref<8x1xf32, #tpu.memory_space<vmem>>, %arg8: memref<16x128xf32, #tpu.memory_space<vmem>>, %arg9: memref<16x128xf32, #tpu.memory_space<vmem>>) attributes {dimension_semantics = [#tpu.dimension_semantics<parallel>], iteration_bounds = array<i64: 2>, scalar_prefetch = 0 : i64, scratch_operands = 1 : i64, tpu.core_type = #tpu.core_type<tc>, window_params = [{transform_indices = @transform_0, window_bounds = array<i64: 8, 128>}, {pipeline_mode = #tpu.pipeline_mode<synchronous>, transform_indices = @transform_1, window_bounds = array<i64: 128, 128>}, {pipeline_mode = #tpu.pipeline_mode<synchronous>, transform_indices = @transform_2, window_bounds = array<i64: 128, 128>}, {pipeline_mode = #tpu.pipeline_mode<synchronous>, transform_indices = @transform_3, window_bounds = array<i64: 4, 8, 128>}, {pipeline_mode = #tpu.pipeline_mode<synchronous>, transform_indices = @transform_4, window_bounds = array<i64: 4, 8, 128>}, {pipeline_mode = #tpu.pipeline_mode<synchronous>, transform_indices = @transform_5, window_bounds = array<i64: 8, 4>}, {pipeline_mode = #tpu.pipeline_mode<synchronous>, transform_indices = @transform_6, window_bounds = array<i64: 8, 1>}, {transform_indices = @transform_7, window_bounds = array<i64: 16, 128>}]} {
    %c0 = arith.constant 0 : index
    %c0_0 = arith.constant 0 : index
    %0 = vector.load %arg1[%c0, %c0_0] : memref<8x128xf32, #tpu.memory_space<vmem>>, vector<8x128xf32>
    %c0_1 = arith.constant 0 : index
    %c0_2 = arith.constant 0 : index
    %1 = vector.load %arg2[%c0_1, %c0_2] : memref<128x128xf32, #tpu.memory_space<vmem>>, vector<128x128xf32>
    %cst = arith.constant dense<0.000000e+00> : vector<8x128xf32>
    %2 = tpu.matmul %0, %1, %cst {dimension_numbers = #tpu.dot_dimension_numbers<[1], [0], [0], [1], [0, 0, 1, 1], [], []>} : vector<8x128xf32>, vector<128x128xf32>, vector<8x128xf32> -> vector<8x128xf32>
    %c64_i32 = arith.constant 64 : i32
    %3 = tpu.dynamic_rotate %2 by %c64_i32 dim 1 : vector<8x128xf32>, i32 -> vector<8x128xf32>
    %cst_3 = arith.constant 0.000000e+00 : f32
    %4 = vector.broadcast %cst_3 : f32 to vector<8x128xf32>
    %5 = vector.extract_strided_slice %2 {offsets = [0, 0], sizes = [1, 128], strides = [1, 1]} : vector<8x128xf32> to vector<1x128xf32>
    %c0_4 = arith.constant 0 : index
    %c0_5 = arith.constant 0 : index
    %c0_6 = arith.constant 0 : index
    %6 = vector.load %arg4[%c0_4, %c0_5, %c0_6] : memref<4x8x128xf32, #tpu.memory_space<vmem>>, vector<1x8x128xf32>
    %7 = vector.shape_cast %6 : vector<1x8x128xf32> to vector<8x128xf32>
    %8 = vector.broadcast %5 : vector<1x128xf32> to vector<8x128xf32>
    %9 = arith.mulf %8, %7 : vector<8x128xf32>
    %10 = arith.addf %4, %9 : vector<8x128xf32>
    %11 = vector.extract_strided_slice %3 {offsets = [0, 0], sizes = [1, 128], strides = [1, 1]} : vector<8x128xf32> to vector<1x128xf32>
    %c0_7 = arith.constant 0 : index
    %c0_8 = arith.constant 0 : index
    %c0_9 = arith.constant 0 : index
    %12 = vector.load %arg5[%c0_7, %c0_8, %c0_9] : memref<4x8x128xf32, #tpu.memory_space<vmem>>, vector<1x8x128xf32>
    %13 = vector.shape_cast %12 : vector<1x8x128xf32> to vector<8x128xf32>
    %14 = vector.broadcast %11 : vector<1x128xf32> to vector<8x128xf32>
    %15 = arith.mulf %14, %13 : vector<8x128xf32>
    %16 = arith.addf %10, %15 : vector<8x128xf32>
    %17 = vector.extract_strided_slice %2 {offsets = [1, 0], sizes = [1, 128], strides = [1, 1]} : vector<8x128xf32> to vector<1x128xf32>
    %c1 = arith.constant 1 : index
    %c0_10 = arith.constant 0 : index
    %c0_11 = arith.constant 0 : index
    %18 = vector.load %arg4[%c1, %c0_10, %c0_11] : memref<4x8x128xf32, #tpu.memory_space<vmem>>, vector<1x8x128xf32>
    %19 = vector.shape_cast %18 : vector<1x8x128xf32> to vector<8x128xf32>
    %20 = vector.broadcast %17 : vector<1x128xf32> to vector<8x128xf32>
    %21 = arith.mulf %20, %19 : vector<8x128xf32>
    %22 = arith.addf %16, %21 : vector<8x128xf32>
    %23 = vector.extract_strided_slice %3 {offsets = [1, 0], sizes = [1, 128], strides = [1, 1]} : vector<8x128xf32> to vector<1x128xf32>
    %c1_12 = arith.constant 1 : index
    %c0_13 = arith.constant 0 : index
    %c0_14 = arith.constant 0 : index
    %24 = vector.load %arg5[%c1_12, %c0_13, %c0_14] : memref<4x8x128xf32, #tpu.memory_space<vmem>>, vector<1x8x128xf32>
    %25 = vector.shape_cast %24 : vector<1x8x128xf32> to vector<8x128xf32>
    %26 = vector.broadcast %23 : vector<1x128xf32> to vector<8x128xf32>
    %27 = arith.mulf %26, %25 : vector<8x128xf32>
    %28 = arith.addf %22, %27 : vector<8x128xf32>
    %29 = vector.extract_strided_slice %2 {offsets = [2, 0], sizes = [1, 128], strides = [1, 1]} : vector<8x128xf32> to vector<1x128xf32>
    %c2 = arith.constant 2 : index
    %c0_15 = arith.constant 0 : index
    %c0_16 = arith.constant 0 : index
    %30 = vector.load %arg4[%c2, %c0_15, %c0_16] : memref<4x8x128xf32, #tpu.memory_space<vmem>>, vector<1x8x128xf32>
    %31 = vector.shape_cast %30 : vector<1x8x128xf32> to vector<8x128xf32>
    %32 = vector.broadcast %29 : vector<1x128xf32> to vector<8x128xf32>
    %33 = arith.mulf %32, %31 : vector<8x128xf32>
    %34 = arith.addf %28, %33 : vector<8x128xf32>
    %35 = vector.extract_strided_slice %3 {offsets = [2, 0], sizes = [1, 128], strides = [1, 1]} : vector<8x128xf32> to vector<1x128xf32>
    %c2_17 = arith.constant 2 : index
    %c0_18 = arith.constant 0 : index
    %c0_19 = arith.constant 0 : index
    %36 = vector.load %arg5[%c2_17, %c0_18, %c0_19] : memref<4x8x128xf32, #tpu.memory_space<vmem>>, vector<1x8x128xf32>
    %37 = vector.shape_cast %36 : vector<1x8x128xf32> to vector<8x128xf32>
    %38 = vector.broadcast %35 : vector<1x128xf32> to vector<8x128xf32>
    %39 = arith.mulf %38, %37 : vector<8x128xf32>
    %40 = arith.addf %34, %39 : vector<8x128xf32>
    %41 = vector.extract_strided_slice %2 {offsets = [3, 0], sizes = [1, 128], strides = [1, 1]} : vector<8x128xf32> to vector<1x128xf32>
    %c3 = arith.constant 3 : index
    %c0_20 = arith.constant 0 : index
    %c0_21 = arith.constant 0 : index
    %42 = vector.load %arg4[%c3, %c0_20, %c0_21] : memref<4x8x128xf32, #tpu.memory_space<vmem>>, vector<1x8x128xf32>
    %43 = vector.shape_cast %42 : vector<1x8x128xf32> to vector<8x128xf32>
    %44 = vector.broadcast %41 : vector<1x128xf32> to vector<8x128xf32>
    %45 = arith.mulf %44, %43 : vector<8x128xf32>
    %46 = arith.addf %40, %45 : vector<8x128xf32>
    %47 = vector.extract_strided_slice %3 {offsets = [3, 0], sizes = [1, 128], strides = [1, 1]} : vector<8x128xf32> to vector<1x128xf32>
    %c3_22 = arith.constant 3 : index
    %c0_23 = arith.constant 0 : index
    %c0_24 = arith.constant 0 : index
    %48 = vector.load %arg5[%c3_22, %c0_23, %c0_24] : memref<4x8x128xf32, #tpu.memory_space<vmem>>, vector<1x8x128xf32>
    %49 = vector.shape_cast %48 : vector<1x8x128xf32> to vector<8x128xf32>
    %50 = vector.broadcast %47 : vector<1x128xf32> to vector<8x128xf32>
    %51 = arith.mulf %50, %49 : vector<8x128xf32>
    %52 = arith.addf %46, %51 : vector<8x128xf32>
    %c0_25 = arith.constant 0 : index
    %c0_26 = arith.constant 0 : index
    %53 = vector.load %arg9[%c0_25, %c0_26] : memref<16x128xf32, #tpu.memory_space<vmem>>, vector<8x128xf32>
    tpu.vector_store %arg9[%c0_25, %c0_26], %52 {strides = array<i32>} : memref<16x128xf32, #tpu.memory_space<vmem>>, vector<8x128xf32>,
    %cst_27 = arith.constant 0.000000e+00 : f32
    %54 = vector.broadcast %cst_27 : f32 to vector<8x128xf32>
    %55 = vector.extract_strided_slice %2 {offsets = [4, 0], sizes = [1, 128], strides = [1, 1]} : vector<8x128xf32> to vector<1x128xf32>
    %c0_28 = arith.constant 0 : index
    %c0_29 = arith.constant 0 : index
    %c0_30 = arith.constant 0 : index
    %56 = vector.load %arg4[%c0_28, %c0_29, %c0_30] : memref<4x8x128xf32, #tpu.memory_space<vmem>>, vector<1x8x128xf32>
    %57 = vector.shape_cast %56 : vector<1x8x128xf32> to vector<8x128xf32>
    %58 = vector.broadcast %55 : vector<1x128xf32> to vector<8x128xf32>
    %59 = arith.mulf %58, %57 : vector<8x128xf32>
    %60 = arith.addf %54, %59 : vector<8x128xf32>
    %61 = vector.extract_strided_slice %3 {offsets = [4, 0], sizes = [1, 128], strides = [1, 1]} : vector<8x128xf32> to vector<1x128xf32>
    %c0_31 = arith.constant 0 : index
    %c0_32 = arith.constant 0 : index
    %c0_33 = arith.constant 0 : index
    %62 = vector.load %arg5[%c0_31, %c0_32, %c0_33] : memref<4x8x128xf32, #tpu.memory_space<vmem>>, vector<1x8x128xf32>
    %63 = vector.shape_cast %62 : vector<1x8x128xf32> to vector<8x128xf32>
    %64 = vector.broadcast %61 : vector<1x128xf32> to vector<8x128xf32>
    %65 = arith.mulf %64, %63 : vector<8x128xf32>
    %66 = arith.addf %60, %65 : vector<8x128xf32>
    %67 = vector.extract_strided_slice %2 {offsets = [5, 0], sizes = [1, 128], strides = [1, 1]} : vector<8x128xf32> to vector<1x128xf32>
    %c1_34 = arith.constant 1 : index
    %c0_35 = arith.constant 0 : index
    %c0_36 = arith.constant 0 : index
    %68 = vector.load %arg4[%c1_34, %c0_35, %c0_36] : memref<4x8x128xf32, #tpu.memory_space<vmem>>, vector<1x8x128xf32>
    %69 = vector.shape_cast %68 : vector<1x8x128xf32> to vector<8x128xf32>
    %70 = vector.broadcast %67 : vector<1x128xf32> to vector<8x128xf32>
    %71 = arith.mulf %70, %69 : vector<8x128xf32>
    %72 = arith.addf %66, %71 : vector<8x128xf32>
    %73 = vector.extract_strided_slice %3 {offsets = [5, 0], sizes = [1, 128], strides = [1, 1]} : vector<8x128xf32> to vector<1x128xf32>
    %c1_37 = arith.constant 1 : index
    %c0_38 = arith.constant 0 : index
    %c0_39 = arith.constant 0 : index
    %74 = vector.load %arg5[%c1_37, %c0_38, %c0_39] : memref<4x8x128xf32, #tpu.memory_space<vmem>>, vector<1x8x128xf32>
    %75 = vector.shape_cast %74 : vector<1x8x128xf32> to vector<8x128xf32>
    %76 = vector.broadcast %73 : vector<1x128xf32> to vector<8x128xf32>
    %77 = arith.mulf %76, %75 : vector<8x128xf32>
    %78 = arith.addf %72, %77 : vector<8x128xf32>
    %79 = vector.extract_strided_slice %2 {offsets = [6, 0], sizes = [1, 128], strides = [1, 1]} : vector<8x128xf32> to vector<1x128xf32>
    %c2_40 = arith.constant 2 : index
    %c0_41 = arith.constant 0 : index
    %c0_42 = arith.constant 0 : index
    %80 = vector.load %arg4[%c2_40, %c0_41, %c0_42] : memref<4x8x128xf32, #tpu.memory_space<vmem>>, vector<1x8x128xf32>
    %81 = vector.shape_cast %80 : vector<1x8x128xf32> to vector<8x128xf32>
    %82 = vector.broadcast %79 : vector<1x128xf32> to vector<8x128xf32>
    %83 = arith.mulf %82, %81 : vector<8x128xf32>
    %84 = arith.addf %78, %83 : vector<8x128xf32>
    %85 = vector.extract_strided_slice %3 {offsets = [6, 0], sizes = [1, 128], strides = [1, 1]} : vector<8x128xf32> to vector<1x128xf32>
    %c2_43 = arith.constant 2 : index
    %c0_44 = arith.constant 0 : index
    %c0_45 = arith.constant 0 : index
    %86 = vector.load %arg5[%c2_43, %c0_44, %c0_45] : memref<4x8x128xf32, #tpu.memory_space<vmem>>, vector<1x8x128xf32>
    %87 = vector.shape_cast %86 : vector<1x8x128xf32> to vector<8x128xf32>
    %88 = vector.broadcast %85 : vector<1x128xf32> to vector<8x128xf32>
    %89 = arith.mulf %88, %87 : vector<8x128xf32>
    %90 = arith.addf %84, %89 : vector<8x128xf32>
    %91 = vector.extract_strided_slice %2 {offsets = [7, 0], sizes = [1, 128], strides = [1, 1]} : vector<8x128xf32> to vector<1x128xf32>
    %c3_46 = arith.constant 3 : index
    %c0_47 = arith.constant 0 : index
    %c0_48 = arith.constant 0 : index
    %92 = vector.load %arg4[%c3_46, %c0_47, %c0_48] : memref<4x8x128xf32, #tpu.memory_space<vmem>>, vector<1x8x128xf32>
    %93 = vector.shape_cast %92 : vector<1x8x128xf32> to vector<8x128xf32>
    %94 = vector.broadcast %91 : vector<1x128xf32> to vector<8x128xf32>
    %95 = arith.mulf %94, %93 : vector<8x128xf32>
    %96 = arith.addf %90, %95 : vector<8x128xf32>
    %97 = vector.extract_strided_slice %3 {offsets = [7, 0], sizes = [1, 128], strides = [1, 1]} : vector<8x128xf32> to vector<1x128xf32>
    %c3_49 = arith.constant 3 : index
    %c0_50 = arith.constant 0 : index
    %c0_51 = arith.constant 0 : index
    %98 = vector.load %arg5[%c3_49, %c0_50, %c0_51] : memref<4x8x128xf32, #tpu.memory_space<vmem>>, vector<1x8x128xf32>
    %99 = vector.shape_cast %98 : vector<1x8x128xf32> to vector<8x128xf32>
    %100 = vector.broadcast %97 : vector<1x128xf32> to vector<8x128xf32>
    %101 = arith.mulf %100, %99 : vector<8x128xf32>
    %102 = arith.addf %96, %101 : vector<8x128xf32>
    %c8 = arith.constant 8 : index
    %c0_52 = arith.constant 0 : index
    %103 = vector.load %arg9[%c8, %c0_52] : memref<16x128xf32, #tpu.memory_space<vmem>>, vector<8x128xf32>
    tpu.vector_store %arg9[%c8, %c0_52], %102 {strides = array<i32>} : memref<16x128xf32, #tpu.memory_space<vmem>>, vector<8x128xf32>,
    %c0_53 = arith.constant 0 : index
    %c0_54 = arith.constant 0 : index
    %104 = vector.load %arg9[%c0_53, %c0_54] : memref<16x128xf32, #tpu.memory_space<vmem>>, vector<16x128xf32>
    %c0_55 = arith.constant 0 : index
    %c0_56 = arith.constant 0 : index
    %105 = vector.load %arg3[%c0_55, %c0_56] : memref<128x128xf32, #tpu.memory_space<vmem>>, vector<128x128xf32>
    %cst_57 = arith.constant dense<0.000000e+00> : vector<16x128xf32>
    %106 = tpu.matmul %104, %105, %cst_57 {dimension_numbers = #tpu.dot_dimension_numbers<[1], [0], [0], [1], [0, 0, 1, 1], [], []>} : vector<16x128xf32>, vector<128x128xf32>, vector<16x128xf32> -> vector<16x128xf32>
    %c0_58 = arith.constant 0 : index
    %c0_59 = arith.constant 0 : index
    %107 = vector.load %arg6[%c0_58, %c0_59] : memref<8x4xf32, #tpu.memory_space<vmem>>, vector<8x4xf32>
    %c0_60 = arith.constant 0 : index
    %c0_61 = arith.constant 0 : index
    %108 = vector.load %arg7[%c0_60, %c0_61] : memref<8x1xf32, #tpu.memory_space<vmem>>, vector<8x1xf32>
    %109 = vector.extract_strided_slice %0 {offsets = [0, 0], sizes = [4, 128], strides = [1, 1]} : vector<8x128xf32> to vector<4x128xf32>
    %cst_62 = arith.constant dense<0.000000e+00> : vector<8x128xf32>
    %110 = tpu.matmul %107, %109, %cst_62 {dimension_numbers = #tpu.dot_dimension_numbers<[1], [0], [0], [1], [0, 0, 1, 1], [], []>} : vector<8x4xf32>, vector<4x128xf32>, vector<8x128xf32> -> vector<8x128xf32>
    %111 = vector.broadcast %108 : vector<8x1xf32> to vector<8x128xf32>
    %112 = arith.addf %110, %111 : vector<8x128xf32>
    %113 = vector.extract_strided_slice %106 {offsets = [0, 0], sizes = [8, 128], strides = [1, 1]} : vector<16x128xf32> to vector<8x128xf32>
    %114 = arith.addf %112, %113 : vector<8x128xf32>
    %c0_63 = arith.constant 0 : index
    %c0_64 = arith.constant 0 : index
    %115 = vector.load %arg8[%c0_63, %c0_64] : memref<16x128xf32, #tpu.memory_space<vmem>>, vector<8x128xf32>
    tpu.vector_store %arg8[%c0_63, %c0_64], %114 {strides = array<i32>} : memref<16x128xf32, #tpu.memory_space<vmem>>, vector<8x128xf32>,
    %116 = vector.extract_strided_slice %0 {offsets = [4, 0], sizes = [4, 128], strides = [1, 1]} : vector<8x128xf32> to vector<4x128xf32>
    %cst_65 = arith.constant dense<0.000000e+00> : vector<8x128xf32>
    %117 = tpu.matmul %107, %116, %cst_65 {dimension_numbers = #tpu.dot_dimension_numbers<[1], [0], [0], [1], [0, 0, 1, 1], [], []>} : vector<8x4xf32>, vector<4x128xf32>, vector<8x128xf32> -> vector<8x128xf32>
    %118 = vector.broadcast %108 : vector<8x1xf32> to vector<8x128xf32>
    %119 = arith.addf %117, %118 : vector<8x128xf32>
    %120 = vector.extract_strided_slice %106 {offsets = [8, 0], sizes = [8, 128], strides = [1, 1]} : vector<16x128xf32> to vector<8x128xf32>
    %121 = arith.addf %119, %120 : vector<8x128xf32>
    %c8_66 = arith.constant 8 : index
    %c0_67 = arith.constant 0 : index
    %122 = vector.load %arg8[%c8_66, %c0_67] : memref<16x128xf32, #tpu.memory_space<vmem>>, vector<8x128xf32>
    tpu.vector_store %arg8[%c8_66, %c0_67], %121 {strides = array<i32>} : memref<16x128xf32, #tpu.memory_space<vmem>>, vector<8x128xf32>,
    return
  }
  func.func @transform_0(%arg0: i32) -> (i32, i32) {
    %c0_i32 = arith.constant 0 : i32
    %c0_i32_0 = arith.constant 0 : i32
    return %arg0, %c0_i32 : i32, i32
  }
  func.func @transform_1(%arg0: i32) -> (i32, i32) {
    %c0_i32 = arith.constant 0 : i32
    %c0_i32_0 = arith.constant 0 : i32
    %c0_i32_1 = arith.constant 0 : i32
    return %c0_i32, %c0_i32_0 : i32, i32
  }
  func.func @transform_2(%arg0: i32) -> (i32, i32) {
    %c0_i32 = arith.constant 0 : i32
    %c0_i32_0 = arith.constant 0 : i32
    %c0_i32_1 = arith.constant 0 : i32
    return %c0_i32, %c0_i32_0 : i32, i32
  }
  func.func @transform_3(%arg0: i32) -> (i32, i32, i32) {
    %c0_i32 = arith.constant 0 : i32
    %c0_i32_0 = arith.constant 0 : i32
    %c0_i32_1 = arith.constant 0 : i32
    %c0_i32_2 = arith.constant 0 : i32
    return %c0_i32, %c0_i32_0, %c0_i32_1 : i32, i32, i32
  }
  func.func @transform_4(%arg0: i32) -> (i32, i32, i32) {
    %c0_i32 = arith.constant 0 : i32
    %c0_i32_0 = arith.constant 0 : i32
    %c0_i32_1 = arith.constant 0 : i32
    %c0_i32_2 = arith.constant 0 : i32
    return %c0_i32, %c0_i32_0, %c0_i32_1 : i32, i32, i32
  }
  func.func @transform_5(%arg0: i32) -> (i32, i32) {
    %c0_i32 = arith.constant 0 : i32
    %c0_i32_0 = arith.constant 0 : i32
    %c0_i32_1 = arith.constant 0 : i32
    return %c0_i32, %c0_i32_0 : i32, i32
  }
  func.func @transform_6(%arg0: i32) -> (i32, i32) {
    %c0_i32 = arith.constant 0 : i32
    %c0_i32_0 = arith.constant 0 : i32
    %c0_i32_1 = arith.constant 0 : i32
    return %c0_i32, %c0_i32_0 : i32, i32
  }
  func.func @transform_7(%arg0: i32) -> (i32, i32) {
    %c0_i32 = arith.constant 0 : i32
    %c0_i32_0 = arith.constant 0 : i32
    return %arg0, %c0_i32 : i32, i32
  }
}

</mosaic_0001>

<bundles_post_ra>
// kernel: tpu_custom_call.1
= control target key start
LH: loop header
LB: loop body
LE: loop exit
PB: predicated region body
PF: predicated region fallthrough
CT: control target
= control target key end

     0   :  { %12 = vsyncpa [#allocation4], 0  ;;  %s1763_s0 = inlined_call_operand.hbm [shape: f32[16,128], index: 0, kind: input, shape index: {}]   ;;  %s1764_s1 = inlined_call_operand.hbm [shape: f32[128,128], index: 1, kind: input, shape index: {}]   ;;  %s1765_s2 = inlined_call_operand.hbm [shape: f32[128,128], index: 2, kind: input, shape index: {}]   ;;  %s1766_s3 = inlined_call_operand.vmem [shape: f32[4,8,128], index: 3, kind: input, shape index: {}]   ;;  %s1767_s4 = inlined_call_operand.hbm [shape: f32[4,8,128], index: 4, kind: input, shape index: {}]   ;;  %s1768_s5 = inlined_call_operand.vmem [shape: f32[8,4], index: 5, kind: input, shape index: {}]   ;;  %s1769_s6 = inlined_call_operand.vmem [shape: f32[8,1], index: 6, kind: input, shape index: {}]   ;;  %s1770_s7 = inlined_call_operand.hbm [shape: f32[32,128], index: 7, kind: output, shape index: {}]  }
   0x1   :  { %14 = vsyncpa [#allocation4 + $0x1], 0 }
   0x2   :  { %15 = vsyncpa [#allocation7], 0 }
   0x3   :  { %16 = vsyncpa [#allocation10], 0 }
   0x4   :  { %17 = vsyncpa [#allocation5], 0 }
   0x5   :  { %19 = vsyncpa [#allocation5 + $0x1], 0  ;;  %s1455_s24 = smov 0   ;;  %s1457_s25 = smov 0  }
   0x6   :  { %s1459_s26 = smov 0   ;;  %s1461_s27 = smov 0  }
   0x7 LB: > { %s1476_s28 = sadd.s32 4294967295, %s1399_s27   ;;  %s919_s29 = sadd.s32 4294967294, %s1399_s27   ;;  %s1399_s27 = sphi %s1461_s27, %s1796_s27   ;;  %s1395_s26 = sphi %s1459_s26, %s1795_s26   ;;  %s1391_s25 = sphi %s1457_s25, %s1794_s25   ;;  %s1387_s24 = sphi %s1455_s24, %s1793_s24  }
   0x8   : > { %p45_p0 = scmp.ne.s32.totalorder %s1391_s25, %s1387_s24  ;;  %p1771_p1 = scmp.eq.s32.totalorder %s1476_s28, 0 }
   0x9   : > { %p201_p3 = scmp.eq.s32.totalorder %s919_s29, 1  ;;  %p920_p5 = scmp.ge.s32.totalorder %s1399_s27, 1 }
   0xa   : > { %p1485_p4 = por %p1771_p1, %p45_p0  ;;  %p208_p7 = scmp.lt.s32.totalorder %s1399_s27, 3 }
   0xb   : > { %p1490_p6 = por %p201_p3, %p45_p0  ;;  %s1401_s10 = smov [#allocation6]  }
   0xc   : > { %s1775_s30 = scalar_select %p1485_p4, 1, 0 }
   0xd   : > { %s1776_s8 = scalar_select %p1490_p6, 1, 0 }
   0xe   : > { %p1495_p8 = pnand %p920_p5, %p208_p7  ;;  %s220_s11 = sshll.u32 %s1401_s10, 4  ;;  %s1499_s11 = int_to_ptr.vmem [resolvable:$true] %s220_s11 }
   0xf   : > { %1777 = sst [smem:[#allocation16_spill]] %s1776_s8  ;;  %s1402_s13 = smov [#allocation8]  }
  0x10   : > { %s1778_s9 = scalar_select %p1495_p8, 1, 0 }
  0x11   : > { %p1140_p9 = pneg %p1495_p8  ;;  %s233_s14 = sshll.u32 %s1402_s13, 4  ;;  %s1510_s14 = int_to_ptr.vmem [resolvable:$true] %s233_s14 }
  0x12   : > { %s1403_s15 = smov [#allocation9]   ;;  %s1211_s19 = scalar_lea.hbm %s1764_s1, 2048 }
  0x13   : > { %p1506_p11 = pnand %p1140_p9, %p1771_p1  ;;  %s1512_s16 = sshll.u32 %s1403_s15, 4  ;;  %s250_s16 = int_to_ptr.vmem [resolvable:$true] %s1512_s16 }
  0x14   : > { %p1212_p12 = scmp.ne.s32.totalorder %s1764_s1, %s1211_s19  ;;  %p1218_p5 = scmp.lt.u32.totalorder %s1211_s19, %s1764_s1 }
  0x15   : > { %p1522_p13 = pneg %p1506_p11 }
  0x17   : > { %p1214_p0 = pnand %p1522_p13, %p1212_p12 }
  0x19   : > { %p1215_p3 = pneg %p1214_p0 }
  0x1b   : > { %p1220_p7 = pnand %p1218_p5, %p1215_p3 }
  0x1d   : > { %1223 = shalt.err (!%p1220_p7)
}
  0x1e   : > { %s1224_s10 = scalar_lea.vmem %s1499_s11, 2048  ;;  %p1232_p2 = scmp.lt.s32.totalorder %s1499_s11, %s1499_s11 }
  0x1f   : > { %p1225_p9 = scmp.ne.s32.totalorder %s1499_s11, %s1224_s10  ;;  %p1233_p6 = scmp.lt.s32.totalorder %s1224_s10, %s1224_s10 }
  0x21   : > { %p1227_p10 = pnand %p1225_p9, %p1522_p13  ;;  %p1234_p12 = por %p1233_p6, %p1232_p2 }
  0x23   : > { %p1228_p1 = pneg %p1227_p10 }
  0x25   : > { %p1235_p0 = pnand %p1234_p12, %p1228_p1 }
  0x27   : > { %1238 = shalt.err (!%p1235_p0)
}
  0x28   : > { %s1404_s13 = smov 128   ;;  %s1405_s15 = smov 8  }
  0x29   : > { %1143 = dma.hbm_to_vmem [thread:$0]  (!%p1506_p11), %s1764_s1, 2048, %s1499_s11, [#allocation7], %s1404_s13, %s1404_s13, %s1405_s15  }
  0x2a   : > { %s1239_s21 = scalar_lea.hbm %s1765_s2, 2048 }
  0x2b   : > { %p1240_p1 = scmp.ne.s32.totalorder %s1765_s2, %s1239_s21  ;;  %p1246_p10 = scmp.lt.u32.totalorder %s1239_s21, %s1765_s2 }
  0x2d   : > { %p1242_p2 = pnand %p1240_p1, %p1522_p13 }
  0x2f   : > { %p1243_p6 = pneg %p1242_p2 }
  0x31   : > { %p1248_p3 = pnand %p1246_p10, %p1243_p6 }
  0x33   : > { %1251 = shalt.err (!%p1248_p3)
}
  0x34   : > { %s1252_s11 = scalar_lea.vmem %s1510_s14, 2048  ;;  %p1260_p12 = scmp.lt.s32.totalorder %s1510_s14, %s1510_s14 }
  0x35   : > { %p1253_p5 = scmp.ne.s32.totalorder %s1510_s14, %s1252_s11  ;;  %p1261_p0 = scmp.lt.s32.totalorder %s1252_s11, %s1252_s11 }
  0x37   : > { %p1255_p7 = pnand %p1253_p5, %p1522_p13  ;;  %p1262_p1 = por %p1261_p0, %p1260_p12 }
  0x39   : > { %p1256_p9 = pneg %p1255_p7 }
  0x3b   : > { %p1263_p2 = pnand %p1262_p1, %p1256_p9 }
  0x3d   : > { %1266 = shalt.err (!%p1263_p2)
}
  0x3e   : > { %1146 = dma.hbm_to_vmem [thread:$0]  (!%p1506_p11), %s1765_s2, 2048, %s1510_s14, [#allocation7], %s1404_s13, %s1404_s13, %s1405_s15  }
  0x3f   : > { %s1267_s20 = scalar_lea.hbm %s1767_s4, 512 }
  0x40   : > { %p1268_p6 = scmp.ne.s32.totalorder %s1767_s4, %s1267_s20  ;;  %p1274_p5 = scmp.lt.u32.totalorder %s1267_s20, %s1767_s4 }
  0x42   : > { %p1270_p10 = pnand %p1268_p6, %p1522_p13 }
  0x44   : > { %p1271_p3 = pneg %p1270_p10 }
  0x46   : > { %p1276_p7 = pnand %p1274_p5, %p1271_p3 }
  0x48   : > { %1279 = shalt.err (!%p1276_p7)
}
  0x49   : > { %s1280_s11 = scalar_lea.vmem %s250_s16, 512  ;;  %p1288_p1 = scmp.lt.s32.totalorder %s250_s16, %s250_s16 }
  0x4a   : > { %p1281_p9 = scmp.ne.s32.totalorder %s250_s16, %s1280_s11  ;;  %p1289_p2 = scmp.lt.s32.totalorder %s1280_s11, %s1280_s11 }
  0x4c   : > { %p1283_p12 = pnand %p1281_p9, %p1522_p13  ;;  %p1290_p4 = por %p1289_p2, %p1288_p1 }
  0x4e   : > { %p1284_p0 = pneg %p1283_p12 }
  0x50   : > { %p1291_p8 = pnand %p1290_p4, %p1284_p0 }
  0x52   : > { %1294 = shalt.err (!%p1291_p8)
}
  0x53   : > { %1149 = dma.hbm_to_vmem [thread:$0]  (!%p1506_p11), %s1767_s4, 512, %s250_s16, [#allocation10], %s1404_s13, %s1404_s13, %s1405_s15  }
  0x54   : > { %s1595_s22 = sadd.s32 1, %s1399_s27   ;;  %s32_s17 = sadd.s32 1, %s1395_s26 }
  0x55   : > { %s29_s12 = ssub.s32 %s1399_s27, %s1595_s22  ;;  %p39_p8 = scmp.ne.s32.totalorder %s1395_s26, %s1391_s25 }
  0x56   : > { %p30_p4 = scmp.eq.s32.totalorder %s29_s12, 0  ;;  %p40_p13 = scmp.eq.s32.totalorder %s1399_s27, 0 }
  0x57   : > { %p1161_p6 = scmp.lt.s32.totalorder %s1399_s27, 2  ;;  %p1781_p3 = scmp.eq.s32.totalorder %s1476_s28, 1 }
  0x58   : > { %s1605_s18 = scalar_select %p30_p4, %s1395_s26, %s32_s17  }
  0x59   : > { %p41_p10 = por %p40_p13, %p39_p8  ;;  %p1609_p5 = por %p1781_p3, %p39_p8 }
  0x5a   : > { %s269_s20 = sand.u32 1, %s1395_s26   ;;  %s926_s21 = sshll.u32 %s1399_s27, 7 }
  0x5b   : > { %s925_s16 = sshll.u32 %s269_s20, 3  ;;  %s1618_s23 = scalar_lea.hbm %s1763_s0, %s926_s21 }
  0x5c   : > { %s273_s29 = scalar_lea.vmem [#allocation3], %s925_s16  ;;  %p1620_p11 = pnand %p1161_p6, %p41_p10 }
  0x5d   : > { %s280_s10 = sshll.u32 %s273_s29, 4  ;;  %s270_s14 = scalar_lea.sflag [#allocation4], %s269_s20  ;;  %s1624_s10 = int_to_ptr.vmem [resolvable:$true] %s280_s10 }
  0x5e   : > { %s1295_s8 = scalar_lea.hbm %s1618_s23, 128  ;;  %p1297_p9 = pneg %p1620_p11 }
  0x5f   : > { %p1296_p7 = scmp.ne.s32.totalorder %s1618_s23, %s1295_s8  ;;  %s1300_s21 = scalar_lea.hbm %s1763_s0, 256 }
  0x60   : > { %p1301_p1 = scmp.lt.u32.totalorder %s1618_s23, %s1763_s0  ;;  %p1302_p2 = scmp.lt.u32.totalorder %s1300_s21, %s1295_s8 }
  0x61   : > { %p1298_p12 = pnand %p1297_p9, %p1296_p7  ;;  %p1304_p8 = scmp.lt.u32.totalorder %s1295_s8, %s1618_s23 }
  0x62   : > { %p1303_p4 = por %p1302_p2, %p1301_p1 }
  0x63   : > { %p1299_p0 = pneg %p1298_p12 }
  0x64   : > { %p1305_p13 = por %p1304_p8, %p1303_p4 }
  0x66   : > { %p1306_p6 = pnand %p1305_p13, %p1299_p0 }
  0x68   : > { %1309 = shalt.err (!%p1306_p6)
}
  0x69   : > { %s1310_s20 = scalar_lea.vmem %s1624_s10, 128  ;;  %s1406_s15 = smov [#allocation3]  }
  0x6a   : > { %p1311_p10 = scmp.ne.s32.totalorder %s1624_s10, %s1310_s20  ;;  %s1315_s29 = sshll.u32 %s1406_s15, 4  ;;  %s1316_s29 = int_to_ptr.vmem [resolvable:$false] %s1315_s29 }
  0x6b   : > { %s1317_s12 = scalar_lea.vmem %s1316_s29, 256  ;;  %p1318_p12 = scmp.lt.s32.totalorder %s1624_s10, %s1316_s29 }
  0x6c   : > { %p1313_p3 = pnand %p1311_p10, %p1297_p9  ;;  %p1319_p1 = scmp.lt.s32.totalorder %s1317_s12, %s1310_s20 }
  0x6e   : > { %p1314_p7 = pneg %p1313_p3  ;;  %p1320_p2 = por %p1319_p1, %p1318_p12 }
  0x70   : > { %p1321_p4 = pnand %p1320_p2, %p1314_p7 }
  0x72   : > { %1324 = shalt.err (!%p1321_p4)
}
  0x73   : > { %1153 = dma.hbm_to_vmem [thread:$0]  (!%p1620_p11), %s1618_s23, 128, %s1624_s10, %s270_s14  }
  0x74   : > { %p1784_p0 = scmp.ne.s32.totalorder %s1778_s9, 0 }
  0x75   : > { %s1654_s8 = sand.u32 (!%p1784_p0), 1, %s1391_s25   ;;  %p1785_p9 = scmp.ne.s32.totalorder (!%p1784_p0), %s1775_s30, 0 }
  0x76   : > { %289 = sbr.rel (%p1784_p0) target bundleno = 749 (0x2ed), region = 48  ;;  %s928_s17 = sshll.u32 (!%p1784_p0), %s1654_s8, 3 }
  0x77   : > { %s292_s21 = scalar_lea.sflag (!%p1784_p0), [#allocation4], %s1654_s8  ;;  %s1658_s16 = scalar_lea.vmem (!%p1784_p0), [#allocation3], %s928_s17 }
  0x7d   : > { %1370 = dma.done.wait (%p1785_p9), %s292_s21, 128  }
  0x7e   : > { %1372 = vsyncadd (%p1785_p9), %s292_s21, 4294967168  ;;  %p1786_p11 = scmp.eq.s32.totalorder %s1476_s28, 0 }
  0x80   : > { %1374 = dma.done.wait (%p1786_p11), [#allocation7], 4096   ;;  %p1787_p8 = pmov %p1786_p11 }
  0x82   : > { %1376 = vsyncadd (%p1787_p8), [#allocation7], 4294963200  ;;  %p1788_p13 = pmov %p1787_p8 }
  0x83   : > { %p1789_p6 = pmov %p1787_p8 }
  0x84   : > { %1378 = dma.done.wait (%p1788_p13), [#allocation10], 512  }
  0x85   : > { %1380 = vsyncadd (%p1789_p6), [#allocation10], 4294966784  ;;  %v1407_v0 = vmov 0.0|0.0   ;;  %vm1408_vm0 = vmmov 0   ;;  %v1409_v1 = vmov 0.0   ;;  %v340_v2 = vld [vmem:[#allocation6] sm:$0xff]  ;;  %v429_v56 = vlaneseq }
  0x86   : > { %1068 = vmatprep.subr.bf16.mxu0 %v1407_v0  ;;  %1020 = vmatprep.mubr.msk.f32.mxu0 %vm1408_vm0, %v1409_v1  ;;  %v341_v3 = vld [vmem:[#allocation6 + $0x8] sm:$0xff]  ;;  %v342_v4 = vld [vmem:[#allocation6 + $0x10] sm:$0xff]  ;;  %v343_v6 = vld [vmem:[#allocation6 + $0x18] sm:$0xff]  ;;  %vm652_vm1 = vcmask 1043456   ;;  %s1410_s30 = smov 64   ;;  %vm648_vm2 = vcmask 31744  }
  0x87   : > { %v1069_v5 = vpack.c.bf16 %v341_v3, %v340_v2  ;;  %v1072_v7 = vpack.c.bf16 %v343_v6, %v342_v4  ;;  %v344_v8 = vld [vmem:[#allocation6 + $0x20] sm:$0xff]  ;;  %v345_v9 = vld [vmem:[#allocation6 + $0x28] sm:$0xff]  ;;  %v346_v11 = vld [vmem:[#allocation6 + $0x30] sm:$0xff]  ;;  %v1411_v55 = vmov 0   ;;  %v430_v57 = vshrl.u32 %v429_v56, 7  ;;  %s948_s23 = sshll.u32 %s1476_s28, 8 }
  0x88   : > { %v1075_v10 = vpack.c.bf16 %v345_v9, %v344_v8  ;;  %v347_v12 = vld [vmem:[#allocation6 + $0x38] sm:$0xff]  ;;  %v348_v14 = vld [vmem:[#allocation6 + $0x40] sm:$0xff]  ;;  %v349_v15 = vld [vmem:[#allocation6 + $0x48] sm:$0xff]  ;;  %1210 = vset.pattern.permute.xlu0 %v1411_v55  ;;  %s1719_s14 = scalar_lea.hbm %s1770_s7, %s948_s23  ;;  %s804_s13 = scalar_lea.sflag [#allocation5], %s1654_s8 }
  0x89   : > { %1070 = vmatpush3.bf16.msra.mxu0 %v1069_v5  ;;  %v1078_v13 = vpack.c.bf16 %v347_v12, %v346_v11  ;;  %v1081_v16 = vpack.c.bf16 %v349_v15, %v348_v14  ;;  %v350_v17 = vld [vmem:[#allocation6 + $0x50] sm:$0xff]  ;;  %v351_v18 = vld [vmem:[#allocation6 + $0x58] sm:$0xff]  ;;  %v352_v20 = vld [vmem:[#allocation6 + $0x60] sm:$0xff]  ;;  %v494_v58 = vsub.s32 4, %v430_v57  ;;  %v431_v59 = vsub.s32 0, %v430_v57  ;;  %s1412_s28 = smov [#allocation11]  }
  0x8a   : > { %1071 = vmatprep.subr.bf16.mxu0 %v1407_v0  ;;  %v1084_v19 = vpack.c.bf16 %v351_v18, %v350_v17  ;;  %v353_v21 = vld [vmem:[#allocation6 + $0x68] sm:$0xff]  ;;  %v354_v23 = vld [vmem:[#allocation6 + $0x70] sm:$0xff]  ;;  %v355_v24 = vld [vmem:[#allocation6 + $0x78] sm:$0xff]  ;;  %v446_v60 = vsub.s32 1, %v430_v57  ;;  %v508_v61 = vsub.s32 5, %v430_v57  ;;  %v462_v4 = vsub.s32 2, %v430_v57 }
  0x8b   : > { %v1087_v22 = vpack.c.bf16 %v353_v21, %v352_v20  ;;  %v1090_v25 = vpack.c.bf16 %v355_v24, %v354_v23  ;;  %v1675_v26 = vld [vmem:[%s1658_s16] sm:$0xff]  ;;  %v550_v27 = vld [vmem:[#allocation8] sm:$0xff]  ;;  %v551_v28 = vld [vmem:[#allocation8 + $0x8] sm:$0xff]  ;;  %v522_v5 = vsub.s32 6, %v430_v57  ;;  %v536_v21 = vsub.s32 7, %v430_v57  ;;  %s932_s16 = sshll.u32 %s1654_s8, 4 }
  0x8c   : > { %v552_v29 = vld [vmem:[#allocation8 + $0x10] sm:$0xff]  ;;  %v1092_v30 = vpack.c.bf16 %v551_v28, %v550_v27  ;;  %v553_v31 = vld [vmem:[#allocation8 + $0x18] sm:$0xff]  ;;  %v554_v33 = vld [vmem:[#allocation8 + $0x20] sm:$0xff]  ;;  %s1329_s15 = sshll.u32 %s1412_s28, 4  ;;  %s1330_s15 = int_to_ptr.vmem [resolvable:$false] %s1329_s15 }
  0x8d   : > { %1073 = vmatpush3.bf16.msra.mxu0 %v1072_v7  ;;  %v1096_v32 = vpack.c.bf16 %v553_v31, %v552_v29  ;;  %v555_v34 = vld [vmem:[#allocation8 + $0x28] sm:$0xff]  ;;  %v556_v36 = vld [vmem:[#allocation8 + $0x30] sm:$0xff]  ;;  %v557_v37 = vld [vmem:[#allocation8 + $0x38] sm:$0xff]  ;;  %s1331_s29 = scalar_lea.vmem %s1330_s15, 512 }
  0x8e   : > { %1074 = vmatprep.subr.bf16.mxu0 %v1407_v0  ;;  %1093 = vmatprep.subr.bf16.mxu1 %v1092_v30  ;;  %v1100_v35 = vpack.c.bf16 %v555_v34, %v554_v33  ;;  %v1104_v38 = vpack.c.bf16 %v557_v37, %v556_v36  ;;  %v558_v39 = vld [vmem:[#allocation8 + $0x40] sm:$0xff]  ;;  %v559_v40 = vld [vmem:[#allocation8 + $0x48] sm:$0xff]  ;;  %v560_v41 = vld [vmem:[#allocation8 + $0x50] sm:$0xff] }
  0x8f   : > { %1095 = vmatpush3.bf16.msra.mxu1 %v1092_v30  ;;  %v1108_v42 = vpack.c.bf16 %v559_v40, %v558_v39  ;;  %v561_v43 = vld [vmem:[#allocation8 + $0x58] sm:$0xff]  ;;  %v562_v45 = vld [vmem:[#allocation8 + $0x60] sm:$0xff]  ;;  %v563_v46 = vld [vmem:[#allocation8 + $0x68] sm:$0xff] }
  0x90   : > { %1097 = vmatprep.subr.bf16.mxu1 %v1096_v32  ;;  %v1112_v44 = vpack.c.bf16 %v561_v43, %v560_v41  ;;  %v1116_v47 = vpack.c.bf16 %v563_v46, %v562_v45  ;;  %v564_v48 = vld [vmem:[#allocation8 + $0x70] sm:$0xff]  ;;  %v565_v49 = vld [vmem:[#allocation8 + $0x78] sm:$0xff]  ;;  %v435_v3 = vld [vmem:[#allocation9] sm:$0xff] }
  0x91   : > { %1076 = vmatpush3.bf16.msra.mxu0 %v1075_v10  ;;  %v1120_v50 = vpack.c.bf16 %v565_v49, %v564_v48  ;;  %v1687_v53 = vld [vmem:[%s1768_s5] sm:$0xff]  ;;  %v933_v11 = vld [vmem:[%s1766_s3 + $0x8] sm:$0xff]  ;;  %v451_v17 = vld [vmem:[#allocation9 + $0x8] sm:$0xff] }
  0x92   : > { %1077 = vmatprep.subr.bf16.mxu0 %v1407_v0  ;;  %v642_v54 = vld [vmem:[%s1769_s6] sm:$0xff]  ;;  %v934_v24 = vld [vmem:[%s1766_s3 + $0x10] sm:$0xff]  ;;  %v935_v41 = vld [vmem:[%s1766_s3 + $0x18] sm:$0xff] }
  0x93   : > { %1099 = vmatpush3.bf16.msra.mxu1 %v1096_v32  ;;  %v483_v48 = vld [vmem:[#allocation9 + $0x18] sm:$0xff] }
  0x94   : > { %1101 = vmatprep.subr.bf16.mxu1 %v1100_v35 }
  0x95   : > { %1079 = vmatpush3.bf16.msra.mxu0 %v1078_v13 }
  0x96   : > { %1080 = vmatprep.subr.bf16.mxu0 %v1407_v0 }
  0x97   : > { %1103 = vmatpush3.bf16.msra.mxu1 %v1100_v35  ;;  %v467_v35 = vld [vmem:[#allocation9 + $0x10] sm:$0xff] }
  0x98   : > { %1105 = vmatprep.subr.bf16.mxu1 %v1104_v38 }
  0x99   : > { %1082 = vmatpush3.bf16.msra.mxu0 %v1081_v16 }
  0x9a   : > { %1083 = vmatprep.subr.bf16.mxu0 %v1407_v0 }
  0x9b   : > { %1107 = vmatpush3.bf16.msra.mxu1 %v1104_v38 }
  0x9c   : > { %1109 = vmatprep.subr.bf16.mxu1 %v1108_v42 }
  0x9d   : > { %1085 = vmatpush3.bf16.msra.mxu0 %v1084_v19  ;;  %v478_v19 = vsub.s32 3, %v430_v57 }
  0x9e   : > { %1086 = vmatprep.subr.bf16.mxu0 %v1407_v0 }
  0x9f   : > { %1111 = vmatpush3.bf16.msra.mxu1 %v1108_v42 }
  0xa0   : > { %1113 = vmatprep.subr.bf16.mxu1 %v1112_v44 }
  0xa1   : > { %1088 = vmatpush3.bf16.msra.mxu0 %v1087_v22 }
  0xa2   : > { %1089 = vmatprep.subr.bf16.mxu0 %v1407_v0  ;;  %v428_v0 = vld [vmem:[%s1766_s3] sm:$0xff] }
  0xa3   : > { %1115 = vmatpush3.bf16.msra.mxu1 %v1112_v44 }
  0xa4   : > { %1117 = vmatprep.subr.bf16.mxu1 %v1116_v47 }
  0xa5   : > { %1091 = vmatpush3.bf16.msra.mxu0 %v1090_v25 }
  0xa6   : > { %1058 = vmatprep.subr.mxu0 %v1409_v1 }
  0xa7   : > { %1119 = vmatpush3.bf16.msra.mxu1 %v1116_v47 }
  0xa8   : > { %1021 = vmatmul.mubr.f32.vlgmr.msra.gmra.mrb[0].mxu0 %v1675_v26  ;;  %1121 = vmatprep.subr.bf16.mxu1 %v1120_v50 }
  0xa9   : > { %1060 = vmatprep.mubr.msk.f32.mxu0 %vm1408_vm0, %v1409_v1  ;;  %1059 = vmatpush3.msk.msra.mxu0 %vm652_vm1, %v1675_v26 }
  0xab   : > { %1123 = vmatpush3.bf16.msra.mxu1 %v1120_v50 }
  0xac   : > { %1063 = vmatprep.subr.mxu1 %v1409_v1  ;;  %1061 = vmatmul.mubr.msk.f32.vlgmr.msra.gmra.mrb[2].mxu0 %vm648_vm2, %v1687_v53 }
 0x17b   : > { %v422_v51 = vpop.f32.mrb[0].mxu0 }
 0x17c   : > { %426 = vrot.lane.b32.xlu0 %v422_v51, %s1410_s30  ;;  %v1022_v52 = vpop.f32.mrb[1].mxu0  ;;  %v432_v62 = vrot.slane %v422_v51, %v431_v59  ;;  %v495_v63 = vrot.slane %v422_v51, %v494_v58  ;;  %v447_v8 = vrot.slane %v422_v51, %v446_v60  ;;  %v509_v9 = vrot.slane %v422_v51, %v508_v61  ;;  %s337_s30 = scalar_lea.vmem [#allocation11], %s932_s16 }
 0x17d   : > { %v463_v18 = vrot.slane %v422_v51, %v462_v4  ;;  %v523_v20 = vrot.slane %v422_v51, %v522_v5  ;;  %v479_v36 = vrot.slane %v422_v51, %v478_v19  ;;  %v537_v40 = vrot.slane %v422_v51, %v536_v21  ;;  %s817_s9 = sshll.u32 %s337_s30, 4  ;;  %s1714_s9 = int_to_ptr.vmem [resolvable:$true] %s817_s9 }
 0x17e   : > { %v433_v10 = vmul.f32 %v432_v62, %v428_v0  ;;  %v496_v12 = vmul.f32 %v495_v63, %v428_v0  ;;  %v448_v23 = vmul.f32 %v933_v11, %v447_v8  ;;  %v510_v27 = vmul.f32 %v933_v11, %v509_v9  ;;  %s1325_s20 = scalar_lea.vmem %s1714_s9, 256  ;;  %p1332_p12 = scmp.lt.s32.totalorder %s1714_s9, %s1330_s15 }
 0x17f   : > { %v464_v34 = vmul.f32 %v934_v24, %v463_v18  ;;  %v524_v39 = vmul.f32 %v934_v24, %v523_v20  ;;  %v480_v50 = vmul.f32 %v935_v41, %v479_v36  ;;  %p1326_p10 = scmp.ne.s32.totalorder %s1714_s9, %s1325_s20  ;;  %p1333_p1 = scmp.lt.s32.totalorder %s1331_s29, %s1325_s20 }
 0x180   : > { %645 = vperm.xlu0 %1210, %v642_v54   ;;  %v538_v54 = vmul.f32 %v935_v41, %v537_v40 }
 0x181   : > { %p1327_p3 = pnand %p1326_p10, %p1609_p5  ;;  %p1334_p2 = por %p1333_p1, %p1332_p12 }
 0x183   : > { %p1328_p7 = pneg %p1327_p3 }
 0x185   : > { %p1335_p4 = pnand %p1334_p2, %p1328_p7 }
 0x1ee   : > { %v427_v2 = vpop.permute.xlu0 %426 }
 0x1ef   : > { %v502_v6 = vrot.slane %v427_v2, %v494_v58  ;;  %v439_v7 = vrot.slane %v427_v2, %v431_v59  ;;  %v455_v14 = vrot.slane %v427_v2, %v446_v60  ;;  %v516_v16 = vrot.slane %v427_v2, %v508_v61  ;;  %v722_v61 = vpop.f32.mrb[2].mxu0 }
 0x1f0   : > { %v471_v28 = vrot.slane %v427_v2, %v462_v4  ;;  %v530_v29 = vrot.slane %v427_v2, %v522_v5  ;;  %v487_v42 = vrot.slane %v427_v2, %v478_v19  ;;  %v544_v43 = vrot.slane %v427_v2, %v536_v21  ;;  %v1062_v62 = vpop.f32.mrb[3].mxu0 }
 0x1f1   : > { %v440_v13 = vmul.f32 %v439_v7, %v435_v3  ;;  %v503_v15 = vmul.f32 %v502_v6, %v435_v3  ;;  %v456_v31 = vmul.f32 %v455_v14, %v451_v17  ;;  %v517_v33 = vmul.f32 %v516_v16, %v451_v17 }
 0x1f2   : > { %v472_v45 = vmul.f32 %v471_v28, %v467_v35  ;;  %v531_v47 = vmul.f32 %v530_v29, %v467_v35  ;;  %v488_v56 = vmul.f32 %v487_v42, %v483_v48  ;;  %v545_v51 = vmul.f32 %v544_v43, %v483_v48 }
 0x1f3   : > { %v441_v22 = vadd.f32 %v440_v13, %v433_v10  ;;  %v504_v25 = vadd.f32 %v503_v15, %v496_v12  ;;  %v728_v58 = vrot.slane %v1675_v26, 4 }
 0x1f5   : > { %v449_v30 = vadd.f32 %v448_v23, %v441_v22  ;;  %v511_v32 = vadd.f32 %v510_v27, %v504_v25 }
 0x1f7   : > { %v457_v37 = vadd.f32 %v456_v31, %v449_v30  ;;  %v518_v38 = vadd.f32 %v517_v33, %v511_v32 }
 0x1f9   : > { %v465_v44 = vadd.f32 %v464_v34, %v457_v37  ;;  %v525_v46 = vadd.f32 %v524_v39, %v518_v38 }
 0x1fb   : > { %v473_v49 = vadd.f32 %v472_v45, %v465_v44  ;;  %v532_v52 = vadd.f32 %v531_v47, %v525_v46 }
 0x1fd   : > { %v481_v55 = vadd.f32 %v480_v50, %v473_v49  ;;  %v539_v57 = vadd.f32 %v538_v54, %v532_v52 }
 0x1ff   : > { %v489_v59 = vadd.f32 %v488_v56, %v481_v55  ;;  %v546_v60 = vadd.f32 %v545_v51, %v539_v57  ;;  %v646_v63 = vpop.permute.xlu0 %645 }
 0x200   : > { %v723_v0 = vadd.f32 %v722_v61, %v646_v63 }
 0x201   : > { %1055 = vmatprep.mubr.f32.mxu1 %v489_v59 }
 0x202   : > { %1056 = vmatmul.mubr.f32.vlgmr.msra.gmra.mrb[0].mxu1 %v546_v60 }
 0x203   : > { %1064 = vmatpush3.msk.msra.mxu1 %vm652_vm1, %v728_v58  ;;  %1065 = vmatprep.mubr.msk.f32.mxu1 %vm1408_vm0, %v1409_v1 }
 0x206   : > { %1066 = vmatmul.mubr.msk.f32.vlgmr.msra.gmra.mrb[2].mxu1 %vm648_vm2, %v1687_v53 }
 0x2d5   : > { %v1057_v26 = vpop.f32.mrb[0].mxu1 }
 0x2d6   : > { %v632_v2 = vpop.f32.mrb[1].mxu1 }
 0x2d7   : > { %v726_v3 = vadd.f32 %v723_v0, %v632_v2 }
 0x2d9   : > { %727 = vst [vmem:[%s337_s30] sm:$0xff] %v726_v3  ;;  %v797_v4 = vpop.f32.mrb[2].mxu1 }
 0x2da   : > { %v798_v1 = vadd.f32 %v797_v4, %v646_v63  ;;  %v1067_v53 = vpop.f32.mrb[3].mxu1 }
 0x2dc   : > { %v801_v5 = vadd.f32 %v1057_v26, %v798_v1 }
 0x2de   : > { %802 = vst [vmem:[%s337_s30 + $0x8] sm:$0xff] %v801_v5 }
 0x2df   : > { %1338 = shalt.err (!%p1335_p4)
}
 0x2e0   : > { %s1339_s12 = scalar_lea.hbm %s1719_s14, 256  ;;  %s1343_s16 = scalar_lea.hbm %s1770_s7, 512 }
 0x2e1   : > { %p1340_p0 = scmp.ne.s32.totalorder %s1719_s14, %s1339_s12  ;;  %p1344_p8 = scmp.lt.u32.totalorder %s1719_s14, %s1770_s7 }
 0x2e2   : > { %p1345_p13 = scmp.lt.u32.totalorder %s1343_s16, %s1339_s12  ;;  %p1347_p10 = scmp.lt.u32.totalorder %s1339_s12, %s1719_s14 }
 0x2e3   : > { %p1341_p9 = pnand %p1340_p0, %p1609_p5 }
 0x2e4   : > { %p1346_p6 = por %p1345_p13, %p1344_p8 }
 0x2e5   : > { %p1342_p11 = pneg %p1341_p9 }
 0x2e6   : > { %p1348_p3 = por %p1347_p10, %p1346_p6 }
 0x2e8   : > { %p1349_p7 = pnand %p1348_p3, %p1342_p11 }
 0x2ea   : > { %1352 = shalt.err (!%p1349_p7)
}
 0x2eb   : > { %s1413_s10 = smov 128   ;;  %s1414_s11 = smov 8  }
 0x2ec   : > { %1138 = dma.vmem_to_hbm [thread:$0]  (%p1609_p5), %s1714_s9, 256, %s1719_s14, %s804_s13, %s1413_s10, %s1413_s10, %s1414_s11  }
 0x2ed PF: > { %s1790_s20 = sld [smem:[#allocation16_spill]]  ;;  %s832_s28 = sand.u32 1, %s1387_s24  }
 0x2ee   : > { %p1792_p1 = scmp.ge.s32.totalorder %s1399_s27, 2  ;;  %s833_s15 = scalar_lea.sflag [#allocation5], %s832_s28 }
 0x2f3   : > { %p1791_p12 = scmp.ne.s32.totalorder %s1790_s20, 0 }
 0x2f5   : > { %p1155_p2 = pnand %p1792_p1, %p1791_p12 }
 0x2f7   : > { %1382 = dma.done.wait (!%p1155_p2), %s833_s15, 256  }
 0x2f8   : > { %1384 = vsyncadd (!%p1155_p2), %s833_s15, 4294967040  ;;  %p22_p4 = scmp.ge.s32.totalorder %s1595_s22, 4   ;;  %s1793_s24 = smov %s1391_s25 }
 0x2f9   : > { %s1794_s25 = smov %s1395_s26  ;;  %s1795_s26 = smov %s1605_s18 }
 0x2fa   : > { %s1796_s27 = smov %s1595_s22  ;;  %24 = sbr.rel (!%p22_p4) target bundleno = 7 (0x7), region = 111 }
 0x301   :  { %838 = vsyncpa [#allocation4], 1 }
 0x302   :  { %840 = vsyncpa [#allocation4 + $0x1], 1 }
 0x303   :  { %841 = vsyncpa [#allocation7], 1 }
 0x304   :  { %842 = vsyncpa [#allocation10], 1 }
 0x305   :  { %843 = vsyncpa [#allocation5], 1 }
 0x306   :  { %845 = vsyncpa [#allocation5 + $0x1], 1 }

</bundles_post_ra>
